<compile_context>
chip_gen: v7x
topology: tpu7x:2x2x1
jax: 0.10.0
libtpu: 0.0.40
codegen_flags: <defaults>
</compile_context>

<pallas_src>
import functools

import jax
import jax.numpy as jnp
from jax.experimental import pallas as pl
from jax.experimental.pallas import tpu as pltpu

_MiB = 1024 * 1024


def _rmsnorm_kernel(gamma_ref, x_ref, o_ref, *, eps):
    # x_ref : (tile_rows, hidden)   gamma_ref : (1, hidden)
    x = x_ref[...]
    xf = x.astype(jnp.float32)                                  # x.float()
    ms = jnp.mean(xf * xf, axis=-1, keepdims=True)              # mean of squares (XLU)
    inv = jax.lax.rsqrt(ms + eps)                               # EUP rsqrt, hidden under DMA
    normed = (xf * inv).astype(x.dtype)                         # .type_as(x)
    o_ref[...] = (gamma_ref[...] * normed).astype(o_ref.dtype)  # gamma * (...)


def _sublane_multiple(dtype):
    """Minimum row granularity so sub-32-bit dtypes fill sublane packing."""
    itemsize = jnp.dtype(dtype).itemsize
    return {4: 8, 2: 16, 1: 32}.get(itemsize, 8)


def _tpu_vmem_bytes():
    try:
        return int(pltpu.get_tpu_info().vmem_capacity_bytes)
    except Exception:
        return 64 * _MiB  # conservative: assume v7x-sized VMEM


def _is_v7x():
    """2 TensorCores per chip -> core-parallel sharding of the row axis pays off."""
    try:
        kind = jax.devices()[0].device_kind.lower()
        return "v7" in kind
    except Exception:
        return False


def _pick_tile_rows(rows, hidden, x_dtype, out_dtype, vmem_cap, core_parallel):
    x_bytes = jnp.dtype(x_dtype).itemsize
    out_bytes = jnp.dtype(out_dtype).itemsize
    sublane = max(_sublane_multiple(x_dtype), _sublane_multiple(out_dtype))

    small_vmem = vmem_cap <= 64 * _MiB  # v7x: 64 MiB / TC
    # Pipeline budget + per-tile target, generation aware.
    budget = min((40 if small_vmem else 72) * _MiB, int(vmem_cap * 0.6))
    target_tile_bytes = (4 if small_vmem else 8) * _MiB

    # Per-row bytes: double-buffered input + double-buffered output +
    # ~2x f32 in-kernel intermediates (upcast xf tile + one temporary).
    per_row = (2 * x_bytes + 2 * out_bytes + 2 * 4) * hidden
    max_rows_by_vmem = max(sublane, budget // per_row)

    # Big tiles amortize the ~0.35 us per-grid-step overhead on this purely
    # HBM-bandwidth-bound op.
    target_rows = max(sublane, target_tile_bytes // (hidden * x_bytes))

    tile = min(int(target_rows), int(max_rows_by_vmem))
    tile = max(sublane, (tile // sublane) * sublane)

    # Never bigger than the (sublane-rounded) number of rows.
    rows_rounded = int(pl.cdiv(rows, sublane)) * sublane
    tile = min(tile, max(sublane, rows_rounded))

    # On v7x, make sure there are >= 2 grid steps so both TensorCores get work.
    if core_parallel and int(pl.cdiv(rows, tile)) < 2 and rows >= 2 * sublane:
        half = int(pl.cdiv(rows, 2))
        tile = max(sublane, int(pl.cdiv(half, sublane)) * sublane)

    return int(tile)


def rmsnorm(x, gamma, eps=1e-5, tile_rows=None, keep_input_dtype=False,
            dimension_semantics=None):
    """RMSNorm over the last axis. x: (..., hidden); gamma: (hidden,)."""
    orig_shape = x.shape
    hidden = orig_shape[-1]
    rows = 1
    for d in orig_shape[:-1]:
        rows *= d

    if keep_input_dtype:
        # Fast path: write output in x.dtype (halves writeback bytes for bf16
        # activations + f32 gamma). Not torch-parity, hence opt-in.
        gamma = gamma.astype(x.dtype)
    # Default output dtype follows the torch broadcast: promote(gamma, x).
    out_dtype = jnp.promote_types(gamma.dtype, x.dtype)

    vmem_cap = _tpu_vmem_bytes()
    core_parallel = _is_v7x() if dimension_semantics is None else False

    if tile_rows is None:
        tile_rows = _pick_tile_rows(rows, hidden, x.dtype, out_dtype,
                                    vmem_cap, core_parallel)

    x2d = x.reshape(rows, hidden)
    gamma2d = gamma.reshape(1, hidden)

    # Ragged rows: no padding / slicing — Pallas masks the partial last block.
    grid_steps = int(pl.cdiv(rows, tile_rows))

    # Scoped-VMEM limit: pipelined buffers (2x in, 2x out, 2x gamma) plus the
    # in-kernel f32 intermediates (upcast xf tile + one temporary).
    x_bytes = jnp.dtype(x.dtype).itemsize
    out_bytes = jnp.dtype(out_dtype).itemsize
    gamma_bytes = jnp.dtype(gamma.dtype).itemsize
    pipeline_bytes = (2 * tile_rows * hidden * x_bytes
                      + 2 * tile_rows * hidden * out_bytes
                      + 2 * hidden * gamma_bytes)
    intermediate_bytes = 2 * tile_rows * hidden * 4
    vmem_limit = int(min(vmem_cap,
                         max(16 * _MiB,
                             pipeline_bytes + intermediate_bytes + _MiB)))

    if dimension_semantics is None:
        dimension_semantics = ((pltpu.CORE_PARALLEL,) if core_parallel
                               else ("parallel",))

    kernel = functools.partial(_rmsnorm_kernel, eps=eps)

    out2d = pl.pallas_call(
        kernel,
        out_shape=jax.ShapeDtypeStruct((rows, hidden), out_dtype),
        grid_spec=pltpu.PrefetchScalarGridSpec(
            num_scalar_prefetch=0,
            grid=(grid_steps,),
            in_specs=[
                pl.BlockSpec((1, hidden), lambda i: (0, 0)),           # gamma (broadcast)
                pl.BlockSpec((tile_rows, hidden), lambda i: (i, 0)),   # x row tile
            ],
            out_specs=pl.BlockSpec((tile_rows, hidden), lambda i: (i, 0)),
        ),
        compiler_params=pltpu.CompilerParams(
            dimension_semantics=dimension_semantics,
            vmem_limit_bytes=vmem_limit,
        ),
    )(gamma2d, x2d)

    return out2d.reshape(orig_shape)


def rmsnorm_ref(x, gamma, eps=1e-5):
    """Pure-JAX reference mirroring the PyTorch forward."""
    xf = x.astype(jnp.float32)
    normed = (xf * jax.lax.rsqrt(jnp.mean(xf * xf, axis=-1, keepdims=True) + eps)
              ).astype(x.dtype)
    return gamma * normed


if __name__ == "__main__":
    key = jax.random.PRNGKey(0)
    k1, k2 = jax.random.split(key)

    # Case 1: f32 activations, shapes implied by Block (batch, seq, n_emb).
    batch, seq, hidden = 2, 8, 128
    x = jax.random.normal(k1, (batch, seq, hidden), dtype=jnp.float32)
    gamma = jnp.ones((hidden,), dtype=jnp.float32)  # nn.Parameter(ones)
    out = jax.block_until_ready(rmsnorm(x, gamma, eps=1e-5))
    ref = rmsnorm_ref(x, gamma, eps=1e-5)
    assert out.shape == x.shape and out.dtype == ref.dtype
    assert jnp.allclose(out, ref, atol=1e-5, rtol=1e-5), "f32 mismatch vs reference"

    # Case 2: bf16 activations, ragged row count (exercises the masked partial
    # last block — no host-side padding) with f32 gamma (promoted output).
    b2, s2, h2 = 3, 5, 256
    xb = jax.random.normal(k2, (b2, s2, h2), dtype=jnp.float32).astype(jnp.bfloat16)
    gb = 1.0 + 0.01 * jax.random.normal(key, (h2,), dtype=jnp.float32)
    outb = jax.block_until_ready(rmsnorm(xb, gb, eps=1e-6))
    refb = rmsnorm_ref(xb, gb, eps=1e-6)
    assert outb.shape == xb.shape and outb.dtype == refb.dtype
    assert jnp.allclose(outb, refb, atol=3e-2, rtol=3e-2), "bf16 mismatch vs reference"

    # Case 3: opt-in low-writeback path (output stays in x.dtype).
    outc = jax.block_until_ready(rmsnorm(xb, gb, eps=1e-6, keep_input_dtype=True))
    refc = rmsnorm_ref(xb, gb.astype(xb.dtype), eps=1e-6)
    assert outc.dtype == xb.dtype
    assert jnp.allclose(outc.astype(jnp.float32), refc.astype(jnp.float32),
                        atol=3e-2, rtol=3e-2), "keep_input_dtype mismatch"

    print("KERNEL_OK")
</pallas_src>

<mosaic_0001>
module attributes {stable_mosaic.version = 11 : i64} {
  func.func @_rmsnorm_kernel(%arg0: i32, %arg1: memref<1x128xf32, #tpu.memory_space<vmem>>, %arg2: memref<16x128xf32, #tpu.memory_space<vmem>>, %arg3: memref<16x128xf32, #tpu.memory_space<vmem>>) attributes {dimension_semantics = [#tpu.dimension_semantics<parallel>], iteration_bounds = array<i64: 1>, scalar_prefetch = 0 : i64, scratch_operands = 0 : i64, tpu.core_type = #tpu.core_type<tc>, window_params = [{pipeline_mode = #tpu.pipeline_mode<synchronous>, transform_indices = @transform_0, window_bounds = array<i64: 1, 128>}, {transform_indices = @transform_1, window_bounds = array<i64: 16, 128>}, {transform_indices = @transform_2, window_bounds = array<i64: 16, 128>}]} {
    %c0 = arith.constant 0 : index
    %c0_0 = arith.constant 0 : index
    %0 = vector.load %arg2[%c0, %c0_0] : memref<16x128xf32, #tpu.memory_space<vmem>>, vector<16x128xf32>
    %1 = arith.mulf %0, %0 : vector<16x128xf32>
    %cst = arith.constant dense<0.000000e+00> : vector<16xf32>
    %2 = vector.multi_reduction <add>, %1, %cst [1] : vector<16x128xf32> to vector<16xf32>
    %3 = vector.shape_cast %2 : vector<16xf32> to vector<16x1xf32>
    %cst_1 = arith.constant 1.280000e+02 : f32
    %4 = vector.broadcast %cst_1 : f32 to vector<16x1xf32>
    %5 = arith.divf %3, %4 : vector<16x1xf32>
    %cst_2 = arith.constant 9.99999974E-6 : f32
    %6 = vector.broadcast %cst_2 : f32 to vector<16x1xf32>
    %7 = arith.addf %5, %6 : vector<16x1xf32>
    %8 = math.rsqrt %7 : vector<16x1xf32>
    %9 = vector.broadcast %8 : vector<16x1xf32> to vector<16x128xf32>
    %10 = arith.mulf %0, %9 : vector<16x128xf32>
    %c0_3 = arith.constant 0 : index
    %c0_4 = arith.constant 0 : index
    %11 = vector.load %arg1[%c0_3, %c0_4] : memref<1x128xf32, #tpu.memory_space<vmem>>, vector<1x128xf32>
    %12 = vector.broadcast %11 : vector<1x128xf32> to vector<16x128xf32>
    %13 = arith.mulf %12, %10 : vector<16x128xf32>
    %c0_5 = arith.constant 0 : index
    %c0_6 = arith.constant 0 : index
    %14 = vector.load %arg3[%c0_5, %c0_6] : memref<16x128xf32, #tpu.memory_space<vmem>>, vector<16x128xf32>
    tpu.vector_store %arg3[%c0_5, %c0_6], %13 {strides = array<i32>} : memref<16x128xf32, #tpu.memory_space<vmem>>, vector<16x128xf32>,
    return
  }
  func.func @transform_0(%arg0: i32) -> (i32, i32) {
    %c0_i32 = arith.constant 0 : i32
    %c0_i32_0 = arith.constant 0 : i32
    %c0_i32_1 = arith.constant 0 : i32
    return %c0_i32, %c0_i32_0 : i32, i32
  }
  func.func @transform_1(%arg0: i32) -> (i32, i32) {
    %c0_i32 = arith.constant 0 : i32
    %c0_i32_0 = arith.constant 0 : i32
    return %arg0, %c0_i32 : i32, i32
  }
  func.func @transform_2(%arg0: i32) -> (i32, i32) {
    %c0_i32 = arith.constant 0 : i32
    %c0_i32_0 = arith.constant 0 : i32
    return %arg0, %c0_i32 : i32, i32
  }
}

</mosaic_0001>

<bundles_post_ra>
// kernel: tpu_custom_call.1
= control target key start
LH: loop header
LB: loop body
LE: loop exit
PB: predicated region body
PF: predicated region fallthrough
CT: control target
= control target key end

     0   :  { %7 = vsyncpa [#allocation3], 0  ;;  %s235_s0 = inlined_call_operand.hbm [shape: f32[1,128], index: 0, kind: input, shape index: {}]   ;;  %s236_s1 = inlined_call_operand.hbm [shape: f32[16,128], index: 1, kind: input, shape index: {}]   ;;  %s237_s2 = inlined_call_operand.hbm [shape: f32[16,128], index: 2, kind: output, shape index: {}]  }
   0x1   :  { %8 = vsyncpa [#allocation6], 0 }
   0x2   :  { %9 = vsyncpa [#allocation4], 0  ;;  %s166_s9 = smov [#allocation2]   ;;  %s167_s11 = smov [#allocation5]  }
   0x3   :  { %s16_s10 = sshll.u32 %s166_s9, 4  ;;  %s25_s12 = sshll.u32 %s167_s11, 4  ;;  %s17_s10 = int_to_ptr.vmem [resolvable:$true] %s16_s10  ;;  %s186_s12 = int_to_ptr.vmem [resolvable:$true] %s25_s12 }
   0x4   :  { %s94_s15 = scalar_lea.hbm %s235_s0, 16 }
   0x5   :  { %p95_p0 = scmp.ne.s32.totalorder %s235_s0, %s94_s15  ;;  %p98_p1 = scmp.lt.u32.totalorder %s94_s15, %s235_s0 }
   0x7   :  { %p100_p2 = pnand %p98_p1, %p95_p0 }
   0x9   :  { %103 = shalt.err (!%p100_p2)
}
   0xa   :  { %s104_s20 = scalar_lea.vmem %s17_s10, 16  ;;  %s108_s21 = scalar_lea.vmem %s17_s10, 32 }
   0xb   :  { %p105_p3 = scmp.ne.s32.totalorder %s17_s10, %s104_s20  ;;  %p109_p4 = scmp.lt.s32.totalorder %s17_s10, %s17_s10 }
   0xc   :  { %p110_p5 = scmp.lt.s32.totalorder %s108_s21, %s104_s20 }
   0xe   :  { %p111_p6 = por %p110_p5, %p109_p4 }
  0x10   :  { %p112_p7 = pnand %p111_p6, %p105_p3 }
  0x12   :  { %115 = shalt.err (!%p112_p7)
}
  0x13   :  { %19 = dma.hbm_to_vmem [thread:$0]  %s235_s0, 16, %s17_s10, [#allocation3]  }
  0x14   :  { %s116_s26 = scalar_lea.hbm %s236_s1, 256 }
  0x15   :  { %p117_p8 = scmp.ne.s32.totalorder %s236_s1, %s116_s26  ;;  %p120_p9 = scmp.lt.u32.totalorder %s116_s26, %s236_s1 }
  0x17   :  { %p122_p10 = pnand %p120_p9, %p117_p8 }
  0x19   :  { %125 = shalt.err (!%p122_p10)
}
  0x1a   :  { %s126_s3 = scalar_lea.vmem %s186_s12, 256  ;;  %p131_p12 = scmp.lt.s32.totalorder %s186_s12, %s186_s12 }
  0x1b   :  { %p127_p11 = scmp.ne.s32.totalorder %s186_s12, %s126_s3  ;;  %p132_p13 = scmp.lt.s32.totalorder %s126_s3, %s126_s3 }
  0x1d   :  { %p133_p0 = por %p132_p13, %p131_p12 }
  0x1f   :  { %p134_p1 = pnand %p133_p0, %p127_p11 }
  0x21   :  { %137 = shalt.err (!%p134_p1)
}
  0x22   :  { %s168_s0 = smov 128   ;;  %s169_s4 = smov 8  }
  0x23   :  { %31 = dma.hbm_to_vmem [thread:$0]  %s236_s1, 256, %s186_s12, [#allocation6], %s168_s0, %s168_s0, %s169_s4  }
  0x24   :  { %160 = dma.done.wait [#allocation3], 16  }
  0x25   :  { %161 = vsyncadd [#allocation3], 4294967280 }
  0x26   :  { %162 = dma.done.wait [#allocation6], 256  }
  0x27   :  { %163 = vsyncadd [#allocation6], 4294967040  ;;  %v38_v0 = vld [vmem:[#allocation5] sm:$0xff]  ;;  %v39_v1 = vld [vmem:[#allocation5 + $0x8] sm:$0xff]  ;;  %s170_s1 = smov [#allocation7]  }
  0x28   :  { %v40_v2 = vmul.f32 %v38_v0, %v38_v0  ;;  %v41_v3 = vmul.f32 %v39_v1, %v39_v1  ;;  %v84_v11 = vld [vmem:[#allocation2] ss:$0 sm:$0xff]  ;;  %s71_s7 = sshll.u32 %s170_s1, 4  ;;  %s72_s7 = int_to_ptr.vmem [resolvable:$true] %s71_s7 }
  0x29   :  { %s138_s8 = scalar_lea.vmem %s72_s7, 256  ;;  %p143_p3 = scmp.lt.s32.totalorder %s72_s7, %s72_s7 }
  0x2a   :  { %42 = vadd.xlane.f32.xlu0 %v40_v2  ;;  %p139_p2 = scmp.ne.s32.totalorder %s72_s7, %s138_s8  ;;  %p144_p4 = scmp.lt.s32.totalorder %s138_s8, %s138_s8 }
  0x2c   :  { %p145_p5 = por %p144_p4, %p143_p3 }
  0x2e   :  { %44 = vadd.xlane.f32.xlu0 %v41_v3  ;;  %p146_p6 = pnand %p145_p5, %p139_p2 }
  0xb7   :  { %v43_v4 = vpop.xlane.xlu0 %42 }
  0xb8   :  { %v47_v5 = vmul.f32 0.0078125, %v43_v4 }
  0xba   :  { %v49_v6 = vadd.f32 1e-05, %v47_v5 }
  0xbb   :  { %v45_v7 = vpop.xlane.xlu0 %44 }
  0xbc   :  { %90 = vrsqrt.f32 %v49_v6  ;;  %v48_v8 = vmul.f32 0.0078125, %v45_v7 }
  0xbe   :  { %v50_v9 = vadd.f32 1e-05, %v48_v8 }
  0xc0   :  { %92 = vrsqrt.f32 %v50_v9 }
  0xc6   :  { %v91_v10 = vpop.eup %90 }
  0xc7   :  { %v53_v12 = vmul.f32 %v91_v10, %v38_v0 }
  0xc9   :  { %v62_v13 = vmul.f32 %v84_v11, %v53_v12 }
  0xca   :  { %v93_v14 = vpop.eup %92 }
  0xcb   :  { %v54_v15 = vmul.f32 %v93_v14, %v39_v1  ;;  %64 = vst [vmem:[#allocation7] sm:$0xff] %v62_v13 }
  0xcd   :  { %v63_v16 = vmul.f32 %v84_v11, %v54_v15 }
  0xcf   :  { %65 = vst [vmem:[#allocation7 + $0x8] sm:$0xff] %v63_v16 }
  0xd0   :  { %149 = shalt.err (!%p146_p6)
}
  0xd1   :  { %s150_s11 = scalar_lea.hbm %s237_s2, 256 }
  0xd2   :  { %p151_p7 = scmp.ne.s32.totalorder %s237_s2, %s150_s11  ;;  %p154_p8 = scmp.lt.u32.totalorder %s150_s11, %s237_s2 }
  0xd4   :  { %p156_p9 = pnand %p154_p8, %p151_p7 }
  0xd6   :  { %159 = shalt.err (!%p156_p9)
}
  0xd7   :  { %77 = dma.vmem_to_hbm [thread:$0]  %s72_s7, 256, %s237_s2, [#allocation4], %s168_s0, %s168_s0, %s169_s4  }
  0xd8   :  { %164 = dma.done.wait [#allocation4], 256  }
  0xd9   :  { %165 = vsyncadd [#allocation4], 4294967040 }
  0xda   :  { %81 = vsyncpa [#allocation3], 1 }
  0xdb   :  { %82 = vsyncpa [#allocation6], 1 }
  0xdc   :  { %83 = vsyncpa [#allocation4], 1 }

</bundles_post_ra>
